<compile_context>
chip_gen: v5e
topology: v5e:2x2
jax: 0.10.0
libtpu: 0.0.40
codegen_flags: <defaults>
</compile_context>

<pallas_src>
import functools

import jax
import jax.numpy as jnp
from jax.experimental import pallas as pl
from jax.experimental.pallas import tpu as pltpu


def _layernorm_kernel(x_ref, g_ref, b_ref, o_ref, *, eps, c):
    # Block: (Nb, C, T) — channels on sublanes, pixels on lanes.
    x = x_ref[...].astype(jnp.float32)                          # (Nb, C, T)
    inv_c = 1.0 / c
    mean = jnp.sum(x, axis=1, keepdims=True) * inv_c            # (Nb, 1, T)
    xc = x - mean
    var = jnp.sum(xc * xc, axis=1, keepdims=True) * inv_c       # unbiased=False
    # PyTorch adds eps to std (not var) — keep that exact placement.
    # Hoist the divide: one reciprocal per pixel on the (Nb,1,T) row, then only
    # multiplies over the full (Nb,C,T) block.
    inv = 1.0 / (jnp.sqrt(var) + eps)                           # (Nb, 1, T)
    g = g_ref[...].astype(jnp.float32)[None]                    # (1, C, 1)
    b = b_ref[...].astype(jnp.float32)[None]                    # (1, C, 1)
    o_ref[...] = ((xc * inv) * g + b).astype(o_ref.dtype)


def layer_norm_nchw(x, g, b, *, eps=1e-5,
                    vmem_block_budget_bytes=16 * 1024 * 1024,
                    min_grid_steps=8):
    """LayerNorm over the channel dim of an NCHW tensor.

    x: (N, C, H, W); g, b: (C,) per-channel scale / shift.
    """
    N, C, H, W = x.shape
    HW = H * W
    x2 = x.reshape(N, C, HW)  # merge contiguous trailing dims: free, no copy

    itemsize = jnp.dtype(x.dtype).itemsize
    # Per-element VMEM cost of one block: double-buffered input (2x) +
    # double-buffered output (2x) + ~3 live f32 temporaries (x, xc, result)
    # inside the kernel body.
    bytes_per_elem = 4 * itemsize + 3 * 4

    if HW >= 128:
        nb = 1
        # Largest 128-multiple tile that fits the per-block budget.
        max_pixels = max(128, vmem_block_budget_bytes // (C * bytes_per_elem))
        tile = max(128, (max_pixels // 128) * 128)
        hw_padded = ((HW + 127) // 128) * 128
        tile = min(tile, hw_padded)
        # Keep enough grid steps for megacore sharding (2 TCs on v7x) and for
        # the double-buffer pipeline to have something to overlap.
        if N * pl.cdiv(HW, tile) < min_grid_steps:
            steps_per_n = -(-min_grid_steps // N)           # ceil
            want = -(-HW // steps_per_n)                    # ceil
            want = max(128, ((want + 127) // 128) * 128)
            tile = min(tile, want)
        grid = (pl.cdiv(N, nb), pl.cdiv(HW, tile))
    else:
        # Small spatial extent (e.g. SegFormer stage 4, HW = 49): last-dim
        # block equal to the full array dim is always legal; batch several
        # images per block to amortize the per-step overhead and improve the
        # DMA size instead of issuing one tiny masked step per image.
        tile = HW
        nb = max(1, vmem_block_budget_bytes // max(1, C * HW * bytes_per_elem))
        nb = min(nb, N)
        nb = min(nb, max(1, -(-N // min_grid_steps)))       # keep >= min steps when N allows
        grid = (pl.cdiv(N, nb), 1)

    kernel = functools.partial(_layernorm_kernel, eps=eps, c=C)
    out = pl.pallas_call(
        kernel,
        out_shape=jax.ShapeDtypeStruct((N, C, HW), x.dtype),
        grid_spec=pltpu.PrefetchScalarGridSpec(
            num_scalar_prefetch=0,
            grid=grid,
            in_specs=[
                pl.BlockSpec((nb, C, tile), lambda n, t: (n, 0, t)),
                pl.BlockSpec((C, 1), lambda n, t: (0, 0)),
                pl.BlockSpec((C, 1), lambda n, t: (0, 0)),
            ],
            out_specs=pl.BlockSpec((nb, C, tile), lambda n, t: (n, 0, t)),
        ),
        compiler_params=pltpu.CompilerParams(
            dimension_semantics=("parallel", "parallel"),
            # 48 MiB: above the default scoped limit (so the larger
            # double-buffered tiles fit on v5e/v6e) while leaving headroom
            # under v7x's 64 MiB physical VMEM per TensorCore.
            vmem_limit_bytes=48 * 1024 * 1024,
        ),
    )(x2, g.reshape(C, 1), b.reshape(C, 1))
    return out.reshape(N, C, H, W)


def reference(x, g, b, eps=1e-5):
    """Pure-JAX reference matching the PyTorch module exactly."""
    mean = jnp.mean(x, axis=1, keepdims=True)
    var = jnp.mean((x - mean) ** 2, axis=1, keepdims=True)   # unbiased=False
    std = jnp.sqrt(var)
    return (x - mean) / (std + eps) * g.reshape(1, -1, 1, 1) + b.reshape(1, -1, 1, 1)


if __name__ == "__main__":
    N, C, H, W = 2, 4, 16, 16
    key = jax.random.PRNGKey(0)
    kx, kg, kb = jax.random.split(key, 3)
    x = jax.random.normal(kx, (N, C, H, W), jnp.float32)      # NCHW, like PyTorch
    # Module initializes g=ones, b=zeros; use non-trivial values to exercise
    # the affine path in the correctness check.
    g = 1.0 + 0.1 * jax.random.normal(kg, (C,), jnp.float32)
    b = 0.1 * jax.random.normal(kb, (C,), jnp.float32)

    out = jax.block_until_ready(layer_norm_nchw(x, g, b))
    ref = jax.block_until_ready(reference(x, g, b))

    assert out.shape == (N, C, H, W), out.shape
    err = float(jnp.max(jnp.abs(out - ref)))
    assert err < 1e-5, f"max abs err {err}"
    print("KERNEL_OK")
</pallas_src>

<mosaic_0001>
module attributes {stable_mosaic.version = 11 : i64} {
  func.func @_layernorm_kernel(%arg0: i32, %arg1: i32, %arg2: memref<1x4x128xf32, #tpu.memory_space<vmem>>, %arg3: memref<4x1xf32, #tpu.memory_space<vmem>>, %arg4: memref<4x1xf32, #tpu.memory_space<vmem>>, %arg5: memref<1x4x128xf32, #tpu.memory_space<vmem>>) attributes {dimension_semantics = [#tpu.dimension_semantics<parallel>, #tpu.dimension_semantics<parallel>], iteration_bounds = array<i64: 2, 2>, scalar_prefetch = 0 : i64, scratch_operands = 0 : i64, tpu.core_type = #tpu.core_type<tc>, window_params = [{transform_indices = @transform_0, window_bounds = array<i64: 1, 4, 128>}, {pipeline_mode = #tpu.pipeline_mode<synchronous>, transform_indices = @transform_1, window_bounds = array<i64: 4, 1>}, {pipeline_mode = #tpu.pipeline_mode<synchronous>, transform_indices = @transform_2, window_bounds = array<i64: 4, 1>}, {transform_indices = @transform_3, window_bounds = array<i64: 1, 4, 128>}]} {
    %c0 = arith.constant 0 : index
    %c0_0 = arith.constant 0 : index
    %c0_1 = arith.constant 0 : index
    %0 = vector.load %arg2[%c0, %c0_0, %c0_1] : memref<1x4x128xf32, #tpu.memory_space<vmem>>, vector<1x4x128xf32>
    %cst = arith.constant dense<0.000000e+00> : vector<1x128xf32>
    %1 = vector.multi_reduction <add>, %0, %cst [1] : vector<1x4x128xf32> to vector<1x128xf32>
    %2 = vector.shape_cast %1 : vector<1x128xf32> to vector<1x1x128xf32>
    %cst_2 = arith.constant 2.500000e-01 : f32
    %3 = vector.broadcast %cst_2 : f32 to vector<1x1x128xf32>
    %4 = arith.mulf %2, %3 : vector<1x1x128xf32>
    %5 = vector.broadcast %4 : vector<1x1x128xf32> to vector<1x4x128xf32>
    %6 = arith.subf %0, %5 : vector<1x4x128xf32>
    %7 = arith.mulf %6, %6 : vector<1x4x128xf32>
    %cst_3 = arith.constant dense<0.000000e+00> : vector<1x128xf32>
    %8 = vector.multi_reduction <add>, %7, %cst_3 [1] : vector<1x4x128xf32> to vector<1x128xf32>
    %9 = vector.shape_cast %8 : vector<1x128xf32> to vector<1x1x128xf32>
    %cst_4 = arith.constant 2.500000e-01 : f32
    %10 = vector.broadcast %cst_4 : f32 to vector<1x1x128xf32>
    %11 = arith.mulf %9, %10 : vector<1x1x128xf32>
    %12 = math.sqrt %11 : vector<1x1x128xf32>
    %cst_5 = arith.constant 9.99999974E-6 : f32
    %13 = vector.broadcast %cst_5 : f32 to vector<1x1x128xf32>
    %14 = arith.addf %12, %13 : vector<1x1x128xf32>
    %cst_6 = arith.constant 1.000000e+00 : f32
    %15 = vector.broadcast %cst_6 : f32 to vector<1x1x128xf32>
    %16 = arith.divf %15, %14 : vector<1x1x128xf32>
    %c0_7 = arith.constant 0 : index
    %c0_8 = arith.constant 0 : index
    %17 = vector.load %arg3[%c0_7, %c0_8] : memref<4x1xf32, #tpu.memory_space<vmem>>, vector<4x1xf32>
    %18 = vector.shape_cast %17 : vector<4x1xf32> to vector<1x4x1xf32>
    %c0_9 = arith.constant 0 : index
    %c0_10 = arith.constant 0 : index
    %19 = vector.load %arg4[%c0_9, %c0_10] : memref<4x1xf32, #tpu.memory_space<vmem>>, vector<4x1xf32>
    %20 = vector.shape_cast %19 : vector<4x1xf32> to vector<1x4x1xf32>
    %21 = vector.broadcast %16 : vector<1x1x128xf32> to vector<1x4x128xf32>
    %22 = arith.mulf %6, %21 : vector<1x4x128xf32>
    %23 = vector.broadcast %18 : vector<1x4x1xf32> to vector<1x4x128xf32>
    %24 = arith.mulf %22, %23 : vector<1x4x128xf32>
    %25 = vector.broadcast %20 : vector<1x4x1xf32> to vector<1x4x128xf32>
    %26 = arith.addf %24, %25 : vector<1x4x128xf32>
    %c0_11 = arith.constant 0 : index
    %c0_12 = arith.constant 0 : index
    %c0_13 = arith.constant 0 : index
    %27 = vector.load %arg5[%c0_11, %c0_12, %c0_13] : memref<1x4x128xf32, #tpu.memory_space<vmem>>, vector<1x4x128xf32>
    tpu.vector_store %arg5[%c0_11, %c0_12, %c0_13], %26 {strides = array<i32>} : memref<1x4x128xf32, #tpu.memory_space<vmem>>, vector<1x4x128xf32>,
    return
  }
  func.func @transform_0(%arg0: i32, %arg1: i32) -> (i32, i32, i32) {
    %c0_i32 = arith.constant 0 : i32
    %c0_i32_0 = arith.constant 0 : i32
    return %arg0, %c0_i32, %arg1 : i32, i32, i32
  }
  func.func @transform_1(%arg0: i32, %arg1: i32) -> (i32, i32) {
    %c0_i32 = arith.constant 0 : i32
    %c0_i32_0 = arith.constant 0 : i32
    %c0_i32_1 = arith.constant 0 : i32
    return %c0_i32, %c0_i32_0 : i32, i32
  }
  func.func @transform_2(%arg0: i32, %arg1: i32) -> (i32, i32) {
    %c0_i32 = arith.constant 0 : i32
    %c0_i32_0 = arith.constant 0 : i32
    %c0_i32_1 = arith.constant 0 : i32
    return %c0_i32, %c0_i32_0 : i32, i32
  }
  func.func @transform_3(%arg0: i32, %arg1: i32) -> (i32, i32, i32) {
    %c0_i32 = arith.constant 0 : i32
    %c0_i32_0 = arith.constant 0 : i32
    return %arg0, %c0_i32, %arg1 : i32, i32, i32
  }
}

</mosaic_0001>

<bundles_post_ra>
// kernel: tpu_custom_call.1
= control target key start
LH: loop header
LB: loop body
LE: loop exit
PB: predicated region body
PF: predicated region fallthrough
CT: control target
= control target key end

     0   :  { %8 = vsyncpa [#allocation3], 0  ;;  %s775_s0 = inlined_call_operand.hbm [shape: f32[2,4,256], index: 0, kind: input, shape index: {}]   ;;  %s776_s1 = inlined_call_operand.vmem [shape: f32[4,1], index: 1, kind: input, shape index: {}]   ;;  %s777_s2 = inlined_call_operand.vmem [shape: f32[4,1], index: 2, kind: input, shape index: {}]   ;;  %s778_s3 = inlined_call_operand.hbm [shape: f32[2,4,256], index: 3, kind: output, shape index: {}]  }
   0x1   :  { %10 = vsyncpa [#allocation3 + $0x1], 0 }
   0x2   :  { %11 = vsyncpa [#allocation4], 0 }
   0x3   :  { %13 = vsyncpa [#allocation4 + $0x1], 0  ;;  %s623_s12 = smov 0   ;;  %s625_s13 = smov 0  }
   0x4   :  { %s627_s14 = smov 0   ;;  %s629_s15 = smov 0  }
   0x5   :  { %s631_s16 = smov 0   ;;  %s633_s17 = smov 0  }
   0x6   :  { %s635_s18 = smov 0   ;;  %s637_s19 = smov 0  }
   0x7 LB: > { %s373_s20 = sadd.s32 4294967295, %s600_s19   ;;  %s374_s21 = sadd.s32 4294967294, %s600_s19   ;;  %s600_s19 = sphi %s637_s19, %s19_s19   ;;  %s596_s18 = sphi %s635_s18, %s792_s18   ;;  %s592_s17 = sphi %s633_s17, %s791_s17   ;;  %s588_s16 = sphi %s631_s16, %s790_s16   ;;  %s584_s15 = sphi %s629_s15, %s789_s15   ;;  %s580_s14 = sphi %s627_s14, %s788_s14   ;;  %s576_s13 = sphi %s625_s13, %s787_s13   ;;  %s572_s12 = sphi %s623_s12, %s786_s12  }
   0x8   : > { %s28_s22 = sadd.s32 1, %s592_s17  ;;  %s31_s23 = sadd.s32 1, %s596_s18 }
   0x9   : > { %p29_p0 = scmp.ge.s32.totalorder %s28_s22, 2  ;;  %s40_s24 = sadd.s32 1, %s580_s14 }
   0xa   : > { %p47_p1 = scmp.ne.s32.totalorder %s580_s14, %s576_s13  ;;  %p48_p2 = scmp.eq.s32.totalorder %s600_s19, 0 }
   0xb   : > { %s794_s22 = smov (%p29_p0, %s28_s22), 0  ;;  %s796_s23 = smov (!%p29_p0, %s31_s23), %s596_s18 }
   0xc   : > { %s36_s25 = ssub.s32 %s592_s17, %s794_s22  ;;  %p676_p3 = por %p48_p2, %p47_p1 }
   0xd   : > { %p33_p4 = scmp.ge.s32.totalorder %s796_s23, 2  ;;  %p53_p5 = scmp.ne.s32.totalorder %s576_s13, %s572_s12 }
   0xe   : > { %p54_p6 = scmp.eq.s32.totalorder %s373_s20, 0  ;;  %p121_p7 = scmp.eq.s32.totalorder %s373_s20, 3 }
   0xf   : > { %s798_s23 = smov (%p33_p4, %s796_s23), 0  ;;  %p127_p10 = scmp.eq.s32.totalorder %s374_s21, 3 }
  0x10   : > { %781 = sst [smem:[#allocation8_spill]] %s798_s23  ;;  %p684_p8 = por %p54_p6, %p53_p5 }
  0x11   : > { %p688_p9 = por %p121_p7, %p47_p1  ;;  %s35_s29 = ssub.s32 %s596_s18, %s798_s23 }
  0x12   : > { %s37_s30 = sor.u32 %s36_s25, %s35_s29  ;;  %p694_p12 = por %p127_p10, %p53_p5 }
  0x13   : > { %p38_p11 = scmp.eq.s32.totalorder %s37_s30, 0  ;;  %p400_p13 = scmp.lt.s32.totalorder %s600_s19, 4 }
  0x14   : > { %s153_s5 = sand.u32 1, %s580_s14   ;;  %s378_s8 = sshll.u32 %s596_s18, 1 }
  0x15   : > { %s701_s6 = scalar_select %p38_p11, %s580_s14, %s40_s24  }
  0x16   : > { %s377_s7 = sshll.u32 %s153_s5, 2  ;;  %s161_s9 = sadd.s32 %s592_s17, %s378_s8 }
  0x17   : > { %s157_s10 = scalar_lea.vmem [#allocation2], %s377_s7  ;;  %s379_s20 = sshll.u32 %s161_s9, 2 }
  0x18   : > { %s167_s11 = sshll.u32 %s157_s10, 4  ;;  %s163_s29 = scalar_lea.hbm %s775_s0, %s379_s20  ;;  %s168_s11 = int_to_ptr.vmem [resolvable:$true] %s167_s11 }
  0x19   : > { %p393_p0 = pnand %p400_p13, %p676_p3  ;;  %s165_s30 = sshll.u32 %s163_s29, 4  ;;  %s166_s30 = int_to_ptr.hbm [resolvable:$true] %s165_s30 }
  0x1a   : > { %p380_p1 = scmp.ge.s32.totalorder %s600_s19, 1  ;;  %s154_s23 = scalar_lea.sflag [#allocation3], %s153_s5 }
  0x1b   : > { %395 = dma.hbm_to_vmem [thread:$0]  (!%p393_p0), %s166_s30, 64, %s168_s11, %s154_s23  }
  0x1c   : > { %p172_p2 = scmp.lt.s32.totalorder %s600_s19, 5 }
  0x1e   : > { %p173_p4 = pnand %p380_p1, %p172_p2 }
  0x1f   : > { %s713_s24 = sand.u32 (!%p173_p4), 1, %s576_s13  }
  0x20   : > { %176 = sbr.rel (%p173_p4) target bundleno = 168 (0xa8), region = 32  ;;  %s381_s7 = sshll.u32 (!%p173_p4), %s713_s24, 2 }
  0x21   : > { %s179_s8 = scalar_lea.sflag (!%p173_p4), [#allocation3], %s713_s24  ;;  %s182_s26 = scalar_lea.vmem (!%p173_p4), [#allocation2], %s381_s7 }
  0x25   : > { %563 = dma.done.wait (%p684_p8), %s179_s8, 64  }
  0x26   : > { %565 = vsyncadd (%p684_p8), %s179_s8, 4294967232  ;;  %v602_v0 = vmov 0   ;;  %v254_v1 = vld [vmem:[%s776_s1] sm:$0xf]  ;;  %vm207_vm0 = vcmask 1043456   ;;  %s384_s27 = sshll.u32 %s588_s16, 1 }
  0x27   : > { %467 = vset.pattern.permute.xlu0 %v602_v0  ;;  %v255_v2 = vld [vmem:[%s777_s2] sm:$0xf]  ;;  %s281_s11 = sadd.s32 %s584_s15, %s384_s27  ;;  %s205_s30 = scalar_lea.vmem [#allocation5], %s381_s7 }
  0x28   : > { %259 = vperm.xlu0 %467, %v254_v1   ;;  %v206_v3 = vld [vmem:[%s182_s26] sm:$0xf]  ;;  %s385_s20 = sshll.u32 %s281_s11, 2  ;;  %s285_s8 = sshll.u32 %s205_s30, 4  ;;  %s286_s8 = int_to_ptr.vmem [resolvable:$true] %s285_s8 }
  0x29   : > { %v208_v4 = vsel %vm207_vm0, %v206_v3, 0.0  ;;  %s283_s29 = scalar_lea.hbm %s778_s3, %s385_s20  ;;  %s271_s15 = scalar_lea.sflag [#allocation4], %s713_s24 }
  0x2a   : > { %v209_v5 = vrot.slane %v208_v4, 4  ;;  %s287_s26 = sshll.u32 %s283_s29, 4  ;;  %s522_s7 = scalar_lea.hbm %s778_s3, 16  ;;  %s288_s26 = int_to_ptr.hbm [resolvable:$true] %s287_s26 }
  0x2b   : > { %s516_s16 = sshra.s32 %s288_s26, 4  ;;  %s517_s16 = int_to_ptr.hbm [resolvable:$true] %s516_s16 }
  0x2c   : > { %v210_v6 = vadd.f32 %v209_v5, %v208_v4  ;;  %s518_s23 = scalar_lea.hbm %s517_s16, 4  ;;  %p523_p7 = scmp.lt.s32.totalorder %s517_s16, %s778_s3 }
  0x2d   : > { %p519_p3 = scmp.ne.s32.totalorder %s517_s16, %s518_s23  ;;  %p524_p8 = scmp.lt.s32.totalorder %s522_s7, %s518_s23 }
  0x2e   : > { %v211_v7 = vrot.slane %v210_v6, 2 }
  0x2f   : > { %p520_p5 = pnand %p519_p3, %p688_p9  ;;  %p525_p10 = por %p524_p8, %p523_p7 }
  0x30   : > { %265 = vperm.xlu0 %467, %v255_v2   ;;  %v212_v8 = vadd.f32 %v211_v7, %v210_v6 }
  0x31   : > { %p521_p6 = pneg %p520_p5 }
  0x32   : > { %v213_v9 = vrot.slane %v212_v8, 1 }
  0x33   : > { %p526_p11 = pnand %p525_p10, %p521_p6 }
  0x34   : > { %v214_v10 = vadd.f32 %v213_v9, %v212_v8 }
  0x36   : > { %v215_v11 = vmul.f32 0.25, %v214_v10 }
  0x38   : > { %v216_v12 = vsub.f32 %v206_v3, %v215_v11 }
  0x3a   : > { %v217_v13 = vmul.f32 %v216_v12, %v216_v12 }
  0x3c   : > { %v218_v14 = vsel %vm207_vm0, %v217_v13, 0.0 }
  0x3d   : > { %v219_v15 = vrot.slane %v218_v14, 4 }
  0x3f   : > { %v220_v16 = vadd.f32 %v219_v15, %v218_v14 }
  0x41   : > { %v221_v17 = vrot.slane %v220_v16, 2 }
  0x43   : > { %v222_v18 = vadd.f32 %v221_v17, %v220_v16 }
  0x45   : > { %v223_v19 = vrot.slane %v222_v18, 1 }
  0x47   : > { %v224_v20 = vadd.f32 %v223_v19, %v222_v18 }
  0x49   : > { %v225_v21 = vmul.f32 0.25, %v224_v20 }
  0x4b   : > { %468 = vrsqrt.f32 %v225_v21  ;;  %vm233_vm1 = vcmp.eq.f32.partialorder %v225_v21, inf  ;;  %v236_v29 = vand.u32 2147483648, %v225_v21  ;;  %vm235_vm2 = vcmp.eq.f32.partialorder %v225_v21, 0.0 }
  0x51   : > { %v469_v22 = vpop.eup %468 }
  0x52   : > { %v227_v23 = vmul.f32 %v469_v22, %v225_v21 }
  0x54   : > { %v228_v24 = vmul.f32 %v469_v22, %v227_v23 }
  0x56   : > { %v229_v25 = vmul.f32 0.5, %v228_v24 }
  0x58   : > { %v230_v26 = vsub.f32 1.5, %v229_v25 }
  0x5a   : > { %v231_v27 = vmul.f32 %v469_v22, %v230_v26 }
  0x5c   : > { %v232_v28 = vmul.f32 %v231_v27, %v225_v21 }
  0x5e   : > { %v234_v30 = vsel %vm233_vm1, %v225_v21, %v232_v28 }
  0x5f   : > { %v237_v31 = vsel %vm235_vm2, %v236_v29, %v234_v30 }
  0x60   : > { %v238_v32 = vadd.f32 1e-05, %v237_v31 }
  0x62   : > { %470 = vrcp.f32 %v238_v32  ;;  %vm244_vm3 = vweird.f32 %v238_v32  ;;  %v250_v37 = vand.u32 2147483648, %v238_v32  ;;  %v248_v39 = vand.u32 2147483647, %v238_v32 }
  0x64   : > { %v251_v40 = vor.u32 1.1754944e-38, %v250_v37  ;;  %vm249_vm6 = vcmp.eq.f32.partialorder %v248_v39, 8.507059e+37 }
  0x68   : > { %v471_v33 = vpop.eup %470 }
  0x69   : > { %v240_v34 = vmul.f32 %v471_v33, %v238_v32  ;;  %vm245_vm4 = vweird.f32 %v471_v33 }
  0x6a   : > { %vm246_vm5 = vmor %vm244_vm3, %vm245_vm4 }
  0x6b   : > { %v241_v35 = vsub.f32 1.0, %v240_v34 }
  0x6d   : > { %v242_v36 = vmul.f32 %v471_v33, %v241_v35 }
  0x6f   : > { %v243_v38 = vadd.f32 %v471_v33, %v242_v36 }
  0x71   : > { %v247_v41 = vsel %vm246_vm5, %v471_v33, %v243_v38 }
  0x72   : > { %v252_v43 = vsel %vm249_vm6, %v251_v40, %v247_v41 }
  0x73   : > { %v256_v44 = vmul.f32 %v252_v43, %v216_v12 }
  0x9a   : > { %v260_v42 = vpop.permute.xlu0 %259 }
  0x9b   : > { %v262_v45 = vmul.f32 %v260_v42, %v256_v44 }
  0xa2   : > { %v266_v46 = vpop.permute.xlu0 %265 }
  0xa3   : > { %v268_v47 = vadd.f32 %v266_v46, %v262_v45 }
  0xa5   : > { %269 = vst [vmem:[%s205_s30] sm:$0xf] %v268_v47 }
  0xa6   : > { %529 = shalt.err (!%p526_p11)
}
  0xa7   : > { %390 = dma.vmem_to_hbm [thread:$0]  (%p688_p9), %s286_s8, 64, %s288_s26, %s271_s15  }
  0xa8 PF: > { %p401_p13 = scmp.ge.s32.totalorder %s600_s19, 2  ;;  %s299_s24 = sand.u32 1, %s572_s12  }
  0xa9   : > { %s300_s11 = scalar_lea.sflag [#allocation4], %s299_s24 }
  0xaa   : > { %p397_p0 = pnand %p401_p13, %p694_p12 }
  0xac   : > { %p398_p1 = pneg %p397_p0 }
  0xae   : > { %567 = dma.done.wait (%p398_p1), %s300_s11, 64  }
  0xaf   : > { %569 = vsyncadd (%p398_p1), %s300_s11, 4294967232  ;;  %s19_s19 = sadd.s32 1, %s600_s19   ;;  %s785_s28 = sld [smem:[#allocation8_spill]] }
  0xb0   : > { %p16_p2 = scmp.ge.s32.totalorder %s19_s19, 6   ;;  %s786_s12 = smov %s576_s13 }
  0xb1   : > { %s787_s13 = smov %s580_s14  ;;  %s788_s14 = smov %s701_s6 }
  0xb2   : > { %s789_s15 = smov %s592_s17  ;;  %s790_s16 = smov %s596_s18 }
  0xb3   : > { %s791_s17 = smov %s794_s22  ;;  %18 = sbr.rel (!%p16_p2) target bundleno = 7 (0x7), region = 77 }
  0xb5   : > { %s792_s18 = smov %s785_s28 }
  0xb8   :  { %306 = vsyncpa [#allocation3], 1 }
  0xb9   :  { %308 = vsyncpa [#allocation3 + $0x1], 1 }
  0xba   :  { %309 = vsyncpa [#allocation4], 1 }
  0xbb   :  { %311 = vsyncpa [#allocation4 + $0x1], 1 }

</bundles_post_ra>
